<compile_context>
chip_gen: v7x
topology: tpu7x:2x2x1
jax: 0.10.0
libtpu: 0.0.40
codegen_flags: <defaults>
</compile_context>

<pallas_src>
import jax
import jax.numpy as jnp
from jax.experimental import pallas as pl
from jax.experimental.pallas import tpu as pltpu


def _residual_block_kernel(x_ref, w1_ref, b1_ref, w2_ref, b2_ref, o_ref):
    # x_ref  : (B_blk, H, L)  packed activations, L = 2*W*C (two images on lanes)
    # w*_ref : (3*L, L)       kh-major band weights, block-diagonal over images
    # b*_ref : (1, L)         bias tiled along (image, W)
    # o_ref  : (B_blk, H, L)
    B, H, L = x_ref.shape
    M = B * H
    x = x_ref[...].reshape(M, L)

    # Per-image H-halo masks (roll wraps across image boundaries / block ends,
    # so the wrapped rows must be zeroed per tap).
    h_idx = jax.lax.broadcasted_iota(jnp.int32, (B, H, L), 1).reshape(M, L)
    is_top = h_idx == 0
    is_bot = h_idx == H - 1

    def conv3x3(inp, w_ref, b_ref):
        # H-shifts on the XLU (sublane roll) + zero-mask of wrapped rows, then
        # fuse all three kh taps into a single deep-K matmul (lane-aligned
        # offsets 0, L, 2L).
        x_dn = jnp.where(is_top, 0.0, pltpu.roll(inp, shift=1, axis=0))      # row h -> inp[h-1]
        x_up = jnp.where(is_bot, 0.0, pltpu.roll(inp, shift=M - 1, axis=0))  # row h -> inp[h+1]
        lhs = jnp.concatenate([x_dn, inp, x_up], axis=-1)                    # (M, 3L)
        return jnp.dot(lhs, w_ref[...], preferred_element_type=jnp.float32) + b_ref[...]

    h1 = jnp.maximum(conv3x3(x, w1_ref, b1_ref), 0.0)      # conv1 + bias + ReLU
    out = conv3x3(h1, w2_ref, b2_ref) + x                  # conv2 + bias + residual
    o_ref[...] = out.reshape(B, H, L)


def _band_weight(w_pt, W):
    """PyTorch conv weight (C_out, C_in, 3, 3) -> (3*W*C, W*C) band matrix.

    B[kh*W*C + win*C + ci, w*C + co] = w_pt[co, ci, kh, win - w + 1] when
    |win - w| <= 1, else 0 (bakes SAME padding along W into the matmul).
    """
    C = w_pt.shape[0]
    wt = jnp.transpose(w_pt, (2, 3, 1, 0)).astype(jnp.float32)       # (kh, kw, ci, co)
    kw_idx = jnp.arange(W)[:, None] - jnp.arange(W)[None, :] + 1     # [win, w]
    valid = (kw_idx >= 0) & (kw_idx <= 2)
    gathered = wt[:, jnp.clip(kw_idx, 0, 2), :, :]                   # (kh, win, w, ci, co)
    gathered = jnp.where(valid[None, :, :, None, None], gathered, 0.0)
    band = jnp.transpose(gathered, (0, 1, 3, 2, 4))                  # (kh, win, ci, w, co)
    return band.reshape(3 * W * C, W * C)


def _paired_band_weight(w_pt, W, C):
    """Block-diagonal band weight for two images packed side-by-side on lanes:
    (3*2*W*C, 2*W*C), two independent (W*C, W*C) blocks per kh tap."""
    WC = W * C
    blocks = _band_weight(w_pt, W).reshape(3, WC, WC)
    zero = jnp.zeros_like(blocks)
    top = jnp.concatenate([blocks, zero], axis=2)    # (3, WC, 2WC)
    bot = jnp.concatenate([zero, blocks], axis=2)    # (3, WC, 2WC)
    return jnp.concatenate([top, bot], axis=1).reshape(6 * WC, 2 * WC)


def _choose_pairs_per_step(P, H, L):
    """Image-pairs per grid step: target a few hundred KiB of activations per
    step, but keep >= 2 grid steps when possible so both v7x TCs get work."""
    bytes_per_pair = 2 * H * L * 4                       # in + out slabs, f32
    bblk = max(1, min(P, (512 * 1024) // max(bytes_per_pair, 1)))
    if P >= 2:
        bblk = min(bblk, P // 2)
    while P % bblk:
        bblk -= 1
    return bblk


def residual_block(x_nchw, w1, b1, w2, b2):
    """Forward pass of _ResidualBlock. x_nchw: (N,C,H,W); w*: (C,C,3,3); b*: (C,)."""
    N, C, H, W = x_nchw.shape
    WC = W * C
    L = 2 * WC

    # Pad batch to an even count so two images share the lane axis.
    N_pad = N + (N % 2)
    if N_pad != N:
        x_nchw = jnp.concatenate(
            [x_nchw, jnp.zeros((N_pad - N, C, H, W), x_nchw.dtype)], axis=0)
    P = N_pad // 2

    # Layout plumbing only: NCHW -> (P, H, 2*W*C); lane = member*WC + w*C + c.
    x_packed = (jnp.transpose(x_nchw, (0, 2, 3, 1))      # (N_pad, H, W, C)
                .reshape(P, 2, H, WC)
                .transpose(0, 2, 1, 3)                    # (P, H, 2, WC)
                .reshape(P, H, L)
                .astype(jnp.float32))

    w1_band = _paired_band_weight(w1, W, C)               # (3L, L)
    w2_band = _paired_band_weight(w2, W, C)
    b1_row = jnp.tile(b1.astype(jnp.float32), 2 * W).reshape(1, L)
    b2_row = jnp.tile(b2.astype(jnp.float32), 2 * W).reshape(1, L)

    B_blk = _choose_pairs_per_step(P, H, L)
    grid = (P // B_blk,)

    out_packed = pl.pallas_call(
        _residual_block_kernel,
        out_shape=jax.ShapeDtypeStruct((P, H, L), jnp.float32),
        grid_spec=pltpu.PrefetchScalarGridSpec(
            num_scalar_prefetch=0,
            grid=grid,
            in_specs=[
                pl.BlockSpec((B_blk, H, L), lambda b: (b, 0, 0)),
                pl.BlockSpec((3 * L, L), lambda b: (0, 0)),   # grid-invariant: resident
                pl.BlockSpec((1, L), lambda b: (0, 0)),
                pl.BlockSpec((3 * L, L), lambda b: (0, 0)),
                pl.BlockSpec((1, L), lambda b: (0, 0)),
            ],
            out_specs=pl.BlockSpec((B_blk, H, L), lambda b: (b, 0, 0)),
        ),
        compiler_params=pltpu.CompilerParams(
            dimension_semantics=("parallel",)),  # independent pairs -> megacore sharding
    )(x_packed, w1_band, b1_row, w2_band, b2_row)

    # Unpack back to NCHW and drop any batch padding.
    out = (out_packed.reshape(P, H, 2, WC)
           .transpose(0, 2, 1, 3)
           .reshape(N_pad, H, W, C)
           .transpose(0, 3, 1, 2))
    return out[:N]


def _reference_block(x, w1, b1, w2, b2):
    """Pure-JAX reference matching the PyTorch forward (NCHW)."""
    dn = ("NCHW", "OIHW", "NCHW")
    y = jax.lax.conv_general_dilated(x, w1, (1, 1), "SAME", dimension_numbers=dn)
    y = jnp.maximum(y + b1[None, :, None, None], 0.0)
    y = jax.lax.conv_general_dilated(y, w2, (1, 1), "SAME", dimension_numbers=dn)
    y = y + b2[None, :, None, None]
    return y + x


if __name__ == "__main__":
    N, C, H, W = 2, 4, 16, 16
    key = jax.random.PRNGKey(0)
    kx, kw1, kb1, kw2, kb2 = jax.random.split(key, 5)

    # Deterministic init mimicking nn.Conv2d's uniform(-1/sqrt(fan_in), ...)
    fan_in = C * 3 * 3
    bound = 1.0 / (fan_in ** 0.5)
    x = jax.random.normal(kx, (N, C, H, W), dtype=jnp.float32)
    w1 = jax.random.uniform(kw1, (C, C, 3, 3), jnp.float32, -bound, bound)
    b1 = jax.random.uniform(kb1, (C,), jnp.float32, -bound, bound)
    w2 = jax.random.uniform(kw2, (C, C, 3, 3), jnp.float32, -bound, bound)
    b2 = jax.random.uniform(kb2, (C,), jnp.float32, -bound, bound)

    out = jax.block_until_ready(residual_block(x, w1, b1, w2, b2))
    ref = jax.block_until_ready(_reference_block(x, w1, b1, w2, b2))
    assert out.shape == (N, C, H, W)
    assert jnp.allclose(out, ref, atol=1e-5, rtol=1e-5), "mismatch vs reference conv"

    print("KERNEL_OK")
</pallas_src>

<mosaic_0001>
module attributes {stable_mosaic.version = 11 : i64} {
  func.func @_residual_block_kernel(%arg0: i32, %arg1: memref<1x16x128xf32, #tpu.memory_space<vmem>>, %arg2: memref<384x128xf32, #tpu.memory_space<vmem>>, %arg3: memref<1x128xf32, #tpu.memory_space<vmem>>, %arg4: memref<384x128xf32, #tpu.memory_space<vmem>>, %arg5: memref<1x128xf32, #tpu.memory_space<vmem>>, %arg6: memref<1x16x128xf32, #tpu.memory_space<vmem>>) attributes {dimension_semantics = [#tpu.dimension_semantics<parallel>], iteration_bounds = array<i64: 1>, scalar_prefetch = 0 : i64, scratch_operands = 0 : i64, tpu.core_type = #tpu.core_type<tc>, window_params = [{transform_indices = @transform_0, window_bounds = array<i64: 1, 16, 128>}, {pipeline_mode = #tpu.pipeline_mode<synchronous>, transform_indices = @transform_1, window_bounds = array<i64: 384, 128>}, {pipeline_mode = #tpu.pipeline_mode<synchronous>, transform_indices = @transform_2, window_bounds = array<i64: 1, 128>}, {pipeline_mode = #tpu.pipeline_mode<synchronous>, transform_indices = @transform_3, window_bounds = array<i64: 384, 128>}, {pipeline_mode = #tpu.pipeline_mode<synchronous>, transform_indices = @transform_4, window_bounds = array<i64: 1, 128>}, {transform_indices = @transform_5, window_bounds = array<i64: 1, 16, 128>}]} {
    %c0 = arith.constant 0 : index
    %c0_0 = arith.constant 0 : index
    %c0_1 = arith.constant 0 : index
    %0 = vector.load %arg1[%c0, %c0_0, %c0_1] : memref<1x16x128xf32, #tpu.memory_space<vmem>>, vector<1x16x128xf32>
    %1 = vector.shape_cast %0 : vector<1x16x128xf32> to vector<16x128xf32>
    %2 = tpu.iota {dimensions = array<i32: 1>} : vector<1x16x128xi32>
    %3 = vector.shape_cast %2 : vector<1x16x128xi32> to vector<16x128xi32>
    %c0_i32 = arith.constant 0 : i32
    %4 = vector.broadcast %c0_i32 : i32 to vector<16x128xi32>
    %5 = arith.cmpi eq, %3, %4 : vector<16x128xi32>
    %c15_i32 = arith.constant 15 : i32
    %6 = vector.broadcast %c15_i32 : i32 to vector<16x128xi32>
    %7 = arith.cmpi eq, %3, %6 : vector<16x128xi32>
    %c1_i32 = arith.constant 1 : i32
    %8 = tpu.dynamic_rotate %1 by %c1_i32 dim 0 : vector<16x128xf32>, i32 -> vector<16x128xf32>
    %cst = arith.constant 0.000000e+00 : f32
    %9 = vector.broadcast %cst : f32 to vector<16x128xf32>
    %10 = arith.select %5, %9, %8 : vector<16x128xi1>, vector<16x128xf32>
    %c15_i32_2 = arith.constant 15 : i32
    %11 = tpu.dynamic_rotate %1 by %c15_i32_2 dim 0 : vector<16x128xf32>, i32 -> vector<16x128xf32>
    %cst_3 = arith.constant 0.000000e+00 : f32
    %12 = vector.broadcast %cst_3 : f32 to vector<16x128xf32>
    %13 = arith.select %7, %12, %11 : vector<16x128xi1>, vector<16x128xf32>
    %14 = tpu.concatenate %10, %1, %13 in 1 : vector<16x128xf32>, vector<16x128xf32>, vector<16x128xf32> -> vector<16x384xf32>
    %c0_4 = arith.constant 0 : index
    %c0_5 = arith.constant 0 : index
    %15 = vector.load %arg2[%c0_4, %c0_5] : memref<384x128xf32, #tpu.memory_space<vmem>>, vector<384x128xf32>
    %cst_6 = arith.constant dense<0.000000e+00> : vector<16x128xf32>
    %16 = tpu.matmul %14, %15, %cst_6 {dimension_numbers = #tpu.dot_dimension_numbers<[1], [0], [0], [1], [0, 0, 1, 1], [], []>} : vector<16x384xf32>, vector<384x128xf32>, vector<16x128xf32> -> vector<16x128xf32>
    %c0_7 = arith.constant 0 : index
    %c0_8 = arith.constant 0 : index
    %17 = vector.load %arg3[%c0_7, %c0_8] : memref<1x128xf32, #tpu.memory_space<vmem>>, vector<1x128xf32>
    %18 = vector.broadcast %17 : vector<1x128xf32> to vector<16x128xf32>
    %19 = arith.addf %16, %18 : vector<16x128xf32>
    %cst_9 = arith.constant 0.000000e+00 : f32
    %20 = vector.broadcast %cst_9 : f32 to vector<16x128xf32>
    %21 = arith.maximumf %19, %20 : vector<16x128xf32>
    %c1_i32_10 = arith.constant 1 : i32
    %22 = tpu.dynamic_rotate %21 by %c1_i32_10 dim 0 : vector<16x128xf32>, i32 -> vector<16x128xf32>
    %cst_11 = arith.constant 0.000000e+00 : f32
    %23 = vector.broadcast %cst_11 : f32 to vector<16x128xf32>
    %24 = arith.select %5, %23, %22 : vector<16x128xi1>, vector<16x128xf32>
    %c15_i32_12 = arith.constant 15 : i32
    %25 = tpu.dynamic_rotate %21 by %c15_i32_12 dim 0 : vector<16x128xf32>, i32 -> vector<16x128xf32>
    %cst_13 = arith.constant 0.000000e+00 : f32
    %26 = vector.broadcast %cst_13 : f32 to vector<16x128xf32>
    %27 = arith.select %7, %26, %25 : vector<16x128xi1>, vector<16x128xf32>
    %28 = tpu.concatenate %24, %21, %27 in 1 : vector<16x128xf32>, vector<16x128xf32>, vector<16x128xf32> -> vector<16x384xf32>
    %c0_14 = arith.constant 0 : index
    %c0_15 = arith.constant 0 : index
    %29 = vector.load %arg4[%c0_14, %c0_15] : memref<384x128xf32, #tpu.memory_space<vmem>>, vector<384x128xf32>
    %cst_16 = arith.constant dense<0.000000e+00> : vector<16x128xf32>
    %30 = tpu.matmul %28, %29, %cst_16 {dimension_numbers = #tpu.dot_dimension_numbers<[1], [0], [0], [1], [0, 0, 1, 1], [], []>} : vector<16x384xf32>, vector<384x128xf32>, vector<16x128xf32> -> vector<16x128xf32>
    %c0_17 = arith.constant 0 : index
    %c0_18 = arith.constant 0 : index
    %31 = vector.load %arg5[%c0_17, %c0_18] : memref<1x128xf32, #tpu.memory_space<vmem>>, vector<1x128xf32>
    %32 = vector.broadcast %31 : vector<1x128xf32> to vector<16x128xf32>
    %33 = arith.addf %30, %32 : vector<16x128xf32>
    %34 = arith.addf %33, %1 : vector<16x128xf32>
    %35 = vector.shape_cast %34 : vector<16x128xf32> to vector<1x16x128xf32>
    %c0_19 = arith.constant 0 : index
    %c0_20 = arith.constant 0 : index
    %c0_21 = arith.constant 0 : index
    %36 = vector.load %arg6[%c0_19, %c0_20, %c0_21] : memref<1x16x128xf32, #tpu.memory_space<vmem>>, vector<1x16x128xf32>
    tpu.vector_store %arg6[%c0_19, %c0_20, %c0_21], %35 {strides = array<i32>} : memref<1x16x128xf32, #tpu.memory_space<vmem>>, vector<1x16x128xf32>,
    return
  }
  func.func @transform_0(%arg0: i32) -> (i32, i32, i32) {
    %c0_i32 = arith.constant 0 : i32
    %c0_i32_0 = arith.constant 0 : i32
    %c0_i32_1 = arith.constant 0 : i32
    return %arg0, %c0_i32, %c0_i32_0 : i32, i32, i32
  }
  func.func @transform_1(%arg0: i32) -> (i32, i32) {
    %c0_i32 = arith.constant 0 : i32
    %c0_i32_0 = arith.constant 0 : i32
    %c0_i32_1 = arith.constant 0 : i32
    return %c0_i32, %c0_i32_0 : i32, i32
  }
  func.func @transform_2(%arg0: i32) -> (i32, i32) {
    %c0_i32 = arith.constant 0 : i32
    %c0_i32_0 = arith.constant 0 : i32
    %c0_i32_1 = arith.constant 0 : i32
    return %c0_i32, %c0_i32_0 : i32, i32
  }
  func.func @transform_3(%arg0: i32) -> (i32, i32) {
    %c0_i32 = arith.constant 0 : i32
    %c0_i32_0 = arith.constant 0 : i32
    %c0_i32_1 = arith.constant 0 : i32
    return %c0_i32, %c0_i32_0 : i32, i32
  }
  func.func @transform_4(%arg0: i32) -> (i32, i32) {
    %c0_i32 = arith.constant 0 : i32
    %c0_i32_0 = arith.constant 0 : i32
    %c0_i32_1 = arith.constant 0 : i32
    return %c0_i32, %c0_i32_0 : i32, i32
  }
  func.func @transform_5(%arg0: i32) -> (i32, i32, i32) {
    %c0_i32 = arith.constant 0 : i32
    %c0_i32_0 = arith.constant 0 : i32
    %c0_i32_1 = arith.constant 0 : i32
    return %arg0, %c0_i32, %c0_i32_0 : i32, i32, i32
  }
}

</mosaic_0001>

<bundles_post_ra>
// kernel: tpu_custom_call.1
= control target key start
LH: loop header
LB: loop body
LE: loop exit
PB: predicated region body
PF: predicated region fallthrough
CT: control target
= control target key end

     0   :  { %10 = vsyncpa [#allocation3], 0  ;;  %s1115_s0 = inlined_call_operand.hbm [shape: f32[1,16,128], index: 0, kind: input, shape index: {}]   ;;  %s1116_s1 = inlined_call_operand.hbm [shape: f32[384,128], index: 1, kind: input, shape index: {}]   ;;  %s1117_s2 = inlined_call_operand.vmem [shape: f32[1,128], index: 2, kind: input, shape index: {}]   ;;  %s1118_s3 = inlined_call_operand.hbm [shape: f32[384,128], index: 3, kind: input, shape index: {}]   ;;  %s1119_s4 = inlined_call_operand.vmem [shape: f32[1,128], index: 4, kind: input, shape index: {}]   ;;  %s1120_s5 = inlined_call_operand.hbm [shape: f32[1,16,128], index: 5, kind: output, shape index: {}]  }
   0x1   :  { %11 = vsyncpa [#allocation6], 0 }
   0x2   :  { %12 = vsyncpa [#allocation4], 0  ;;  %s953_s18 = smov [#allocation5]   ;;  %s954_s20 = smov [#allocation2]  }
   0x3   :  { %s30_s19 = sshll.u32 %s953_s18, 4  ;;  %s18_s21 = sshll.u32 %s954_s20, 4  ;;  %s31_s19 = int_to_ptr.vmem [resolvable:$true] %s30_s19  ;;  %s989_s21 = int_to_ptr.vmem [resolvable:$true] %s18_s21 }
   0x4   :  { %s859_s24 = scalar_lea.hbm %s1116_s1, 6144 }
   0x5   :  { %p860_p0 = scmp.ne.s32.totalorder %s1116_s1, %s859_s24  ;;  %p863_p1 = scmp.lt.u32.totalorder %s859_s24, %s1116_s1 }
   0x7   :  { %p865_p2 = pnand %p863_p1, %p860_p0 }
   0x9   :  { %868 = shalt.err (!%p865_p2)
}
   0xa   :  { %s869_s29 = scalar_lea.vmem %s31_s19, 6144  ;;  %p874_p4 = scmp.lt.s32.totalorder %s31_s19, %s31_s19 }
   0xb   :  { %p870_p3 = scmp.ne.s32.totalorder %s31_s19, %s869_s29  ;;  %p875_p5 = scmp.lt.s32.totalorder %s869_s29, %s869_s29 }
   0xd   :  { %p876_p6 = por %p875_p5, %p874_p4 }
   0xf   :  { %p877_p7 = pnand %p876_p6, %p870_p3 }
  0x11   :  { %880 = shalt.err (!%p877_p7)
}
  0x12   :  { %s955_s30 = smov 128   ;;  %s956_s6 = smov 8  }
  0x13   :  { %36 = dma.hbm_to_vmem [thread:$0]  %s1116_s1, 6144, %s31_s19, [#allocation6], %s955_s30, %s955_s30, %s956_s6  }
  0x14   :  { %s881_s11 = scalar_lea.hbm %s1115_s0, 256 }
  0x15   :  { %p882_p8 = scmp.ne.s32.totalorder %s1115_s0, %s881_s11  ;;  %p885_p9 = scmp.lt.u32.totalorder %s881_s11, %s1115_s0 }
  0x17   :  { %p887_p10 = pnand %p885_p9, %p882_p8 }
  0x19   :  { %890 = shalt.err (!%p887_p10)
}
  0x1a   :  { %s891_s16 = scalar_lea.vmem %s989_s21, 256  ;;  %p896_p12 = scmp.lt.s32.totalorder %s989_s21, %s989_s21 }
  0x1b   :  { %p892_p11 = scmp.ne.s32.totalorder %s989_s21, %s891_s16  ;;  %p897_p13 = scmp.lt.s32.totalorder %s891_s16, %s891_s16 }
  0x1d   :  { %p898_p0 = por %p897_p13, %p896_p12 }
  0x1f   :  { %p899_p1 = pnand %p898_p0, %p892_p11 }
  0x21   :  { %902 = shalt.err (!%p899_p1)
}
  0x22   :  { %24 = dma.hbm_to_vmem [thread:$0]  %s1115_s0, 256, %s989_s21, [#allocation3], %s955_s30, %s955_s30, %s956_s6  }
  0x23   :  { %s957_s18 = smov [#allocation7]   ;;  %s903_s23 = scalar_lea.hbm %s1118_s3, 6144 }
  0x24   :  { %s44_s19 = sshll.u32 %s957_s18, 4  ;;  %p904_p2 = scmp.ne.s32.totalorder %s1118_s3, %s903_s23  ;;  %s45_s19 = int_to_ptr.vmem [resolvable:$true] %s44_s19 }
  0x25   :  { %p907_p3 = scmp.lt.u32.totalorder %s903_s23, %s1118_s3 }
  0x27   :  { %p909_p4 = pnand %p907_p3, %p904_p2 }
  0x29   :  { %912 = shalt.err (!%p909_p4)
}
  0x2a   :  { %s913_s28 = scalar_lea.vmem %s45_s19, 6144  ;;  %p918_p6 = scmp.lt.s32.totalorder %s45_s19, %s45_s19 }
  0x2b   :  { %p914_p5 = scmp.ne.s32.totalorder %s45_s19, %s913_s28  ;;  %p919_p7 = scmp.lt.s32.totalorder %s913_s28, %s913_s28 }
  0x2d   :  { %p920_p8 = por %p919_p7, %p918_p6 }
  0x2f   :  { %p921_p9 = pnand %p920_p8, %p914_p5 }
  0x31   :  { %924 = shalt.err (!%p921_p9)
}
  0x32   :  { %50 = dma.hbm_to_vmem [thread:$0]  %s1118_s3, 6144, %s45_s19, [#allocation6], %s955_s30, %s955_s30, %s956_s6  }
  0x33   :  { %947 = dma.done.wait [#allocation3], 256  }
  0x34   :  { %948 = vsyncadd [#allocation3], 4294967040 }
  0x35   :  { %949 = dma.done.wait [#allocation6], 12288  }
  0x36   :  { %950 = vsyncadd [#allocation6], 4294955008  ;;  %v101_v0 = vld [vmem:[#allocation5 + $0x80] sm:$0xff]  ;;  %v102_v1 = vld [vmem:[#allocation5 + $0x88] sm:$0xff]  ;;  %v64_v36 = vlaneseq  ;;  %s958_s8 = smov [#allocation8]  }
  0x37   :  { %v85_v2 = vld [vmem:[#allocation5] sm:$0xff]  ;;  %v725_v3 = vpack.c.bf16 %v102_v1, %v101_v0  ;;  %v86_v4 = vld [vmem:[#allocation5 + $0x8] sm:$0xff]  ;;  %v103_v5 = vld [vmem:[#allocation5 + $0x90] sm:$0xff]  ;;  %s518_s9 = sshll.u32 %s958_s8, 4  ;;  %s519_s9 = int_to_ptr.vmem [resolvable:$true] %s518_s9 }
  0x38   :  { %v104_v6 = vld [vmem:[#allocation5 + $0x98] sm:$0xff]  ;;  %v727_v7 = vpack.c.bf16 %v86_v4, %v85_v2  ;;  %v117_v9 = vld [vmem:[#allocation5 + $0x100] sm:$0xff]  ;;  %v118_v10 = vld [vmem:[#allocation5 + $0x108] sm:$0xff]  ;;  %v1041_v46 = vshrl.u32 %v64_v36, 7  ;;  %s925_s10 = scalar_lea.vmem %s519_s9, 256  ;;  %p930_p11 = scmp.lt.s32.totalorder %s519_s9, %s519_s9 }
  0x39   :  { %v729_v8 = vpack.c.bf16 %v104_v6, %v103_v5  ;;  %v87_v11 = vld [vmem:[#allocation5 + $0x10] sm:$0xff]  ;;  %726 = vmatprep.subr.bf16.mxu0 %v725_v3  ;;  %v757_v12 = vpack.c.bf16 %v118_v10, %v117_v9  ;;  %v88_v13 = vld [vmem:[#allocation5 + $0x18] sm:$0xff]  ;;  %v105_v14 = vld [vmem:[#allocation5 + $0xa0] sm:$0xff]  ;;  %p926_p10 = scmp.ne.s32.totalorder %s519_s9, %s925_s10  ;;  %p931_p12 = scmp.lt.s32.totalorder %s925_s10, %s925_s10 }
  0x3a   :  { %v106_v15 = vld [vmem:[#allocation5 + $0xa8] sm:$0xff]  ;;  %728 = vmatpush3.bf16.msra.mxu0 %v727_v7  ;;  %v731_v16 = vpack.c.bf16 %v88_v13, %v87_v11  ;;  %v119_v17 = vld [vmem:[#allocation5 + $0x110] sm:$0xff]  ;;  %v120_v18 = vld [vmem:[#allocation5 + $0x118] sm:$0xff]  ;;  %vm80_vm0 = vcmp.lt.s32.totalorder %v1041_v46, 7  ;;  %vm73_vm1 = vcmp.lt.s32.totalorder %v1041_v46, 1  ;;  %vm541_vm2 = vcmp.ne.s32.totalorder %v1041_v46, 0 }
  0x3b   :  { %730 = vmatprep.subr.bf16.mxu0 %v729_v8  ;;  %758 = vmatprep.subr.bf16.mxu1 %v757_v12  ;;  %v733_v19 = vpack.c.bf16 %v106_v15, %v105_v14  ;;  %v761_v20 = vpack.c.bf16 %v120_v18, %v119_v17  ;;  %v89_v21 = vld [vmem:[#allocation5 + $0x20] sm:$0xff]  ;;  %v90_v22 = vld [vmem:[#allocation5 + $0x28] sm:$0xff]  ;;  %v107_v23 = vld [vmem:[#allocation5 + $0xb0] sm:$0xff]  ;;  %p932_p13 = por %p931_p12, %p930_p11 }
  0x3c   :  { %760 = vmatpush3.bf16.msra.mxu1 %v757_v12  ;;  %v108_v24 = vld [vmem:[#allocation5 + $0xb8] sm:$0xff]  ;;  %v121_v25 = vld [vmem:[#allocation5 + $0x120] sm:$0xff]  ;;  %v122_v26 = vld [vmem:[#allocation5 + $0x128] sm:$0xff]  ;;  %v735_v28 = vpack.c.bf16 %v90_v22, %v89_v21 }
  0x3d   :  { %762 = vmatprep.subr.bf16.mxu1 %v761_v20  ;;  %v765_v27 = vpack.c.bf16 %v122_v26, %v121_v25  ;;  %v123_v29 = vld [vmem:[#allocation5 + $0x130] sm:$0xff]  ;;  %v124_v30 = vld [vmem:[#allocation5 + $0x138] sm:$0xff]  ;;  %v737_v31 = vpack.c.bf16 %v108_v24, %v107_v23  ;;  %v109_v34 = vld [vmem:[#allocation5 + $0xc0] sm:$0xff]  ;;  %v1061_v24 = vadd.s32 8, %v1041_v46  ;;  %p933_p0 = pnand %p932_p13, %p926_p10 }
  0x3e   :  { %732 = vmatpush3.bf16.msra.mxu0 %v731_v16  ;;  %v91_v32 = vld [vmem:[#allocation5 + $0x30] sm:$0xff]  ;;  %v92_v33 = vld [vmem:[#allocation5 + $0x38] sm:$0xff]  ;;  %v110_v35 = vld [vmem:[#allocation5 + $0xc8] sm:$0xff]  ;;  %v769_v37 = vpack.c.bf16 %v124_v30, %v123_v29 }
  0x3f   :  { %734 = vmatprep.subr.bf16.mxu0 %v733_v19  ;;  %v739_v38 = vpack.c.bf16 %v92_v33, %v91_v32  ;;  %v125_v39 = vld [vmem:[#allocation5 + $0x140] sm:$0xff]  ;;  %v126_v40 = vld [vmem:[#allocation5 + $0x148] sm:$0xff]  ;;  %v741_v41 = vpack.c.bf16 %v110_v35, %v109_v34  ;;  %v111_v44 = vld [vmem:[#allocation5 + $0xd0] sm:$0xff]  ;;  %vm542_vm3 = vcmp.ne.s32.totalorder %v1061_v24, 15 }
  0x40   :  { %764 = vmatpush3.bf16.msra.mxu1 %v761_v20  ;;  %v93_v42 = vld [vmem:[#allocation5 + $0x40] sm:$0xff]  ;;  %v94_v43 = vld [vmem:[#allocation5 + $0x48] sm:$0xff]  ;;  %v112_v45 = vld [vmem:[#allocation5 + $0xd8] sm:$0xff]  ;;  %v773_v47 = vpack.c.bf16 %v126_v40, %v125_v39 }
  0x41   :  { %766 = vmatprep.subr.bf16.mxu1 %v765_v27  ;;  %v1043_v48 = vld [vmem:[#allocation2] sm:$0xff]  ;;  %v743_v49 = vpack.c.bf16 %v94_v43, %v93_v42  ;;  %v128_v51 = vld [vmem:[#allocation5 + $0x158] sm:$0xff]  ;;  %v745_v54 = vpack.c.bf16 %v112_v45, %v111_v44  ;;  %v113_v58 = vld [vmem:[#allocation5 + $0xe0] sm:$0xff] }
  0x42   :  { %736 = vmatpush3.bf16.msra.mxu0 %v735_v28  ;;  %v127_v50 = vld [vmem:[#allocation5 + $0x150] sm:$0xff]  ;;  %204 = vmatprep.mubr.f32.mxu0 %v1043_v48  ;;  %v1046_v52 = vld [vmem:[#allocation2 + $0x8] sm:$0xff]  ;;  %v78_v53 = vrot.slane %v1043_v48, 1  ;;  %v114_v59 = vld [vmem:[#allocation5 + $0xe8] sm:$0xff]  ;;  %v71_v17 = vrot.slane %v1043_v48, 7 }
  0x43   :  { %738 = vmatprep.subr.bf16.mxu0 %v737_v31  ;;  %v95_v55 = vld [vmem:[#allocation5 + $0x50] sm:$0xff]  ;;  %v96_v56 = vld [vmem:[#allocation5 + $0x58] sm:$0xff]  ;;  %v79_v57 = vrot.slane %v1046_v52, 1  ;;  %v777_v60 = vpack.c.bf16 %v128_v51, %v127_v50  ;;  %v129_v63 = vld [vmem:[#allocation5 + $0x160] sm:$0xff]  ;;  %v749_v1 = vpack.c.bf16 %v114_v59, %v113_v58  ;;  %v72_v18 = vrot.slane %v1046_v52, 7 }
  0x44   :  { %768 = vmatpush3.bf16.msra.mxu1 %v765_v27  ;;  %v747_v62 = vpack.c.bf16 %v96_v56, %v95_v55  ;;  %v130_v0 = vld [vmem:[#allocation5 + $0x168] sm:$0xff]  ;;  %v97_v2 = vld [vmem:[#allocation5 + $0x60] sm:$0xff]  ;;  %v115_v4 = vld [vmem:[#allocation5 + $0xf0] sm:$0xff] }
  0x45   :  { %770 = vmatprep.subr.bf16.mxu1 %v769_v37  ;;  %v81_v61 = vsel %vm80_vm0, %v78_v53, %v79_v57  ;;  %v98_v3 = vld [vmem:[#allocation5 + $0x68] sm:$0xff]  ;;  %v116_v5 = vld [vmem:[#allocation5 + $0xf8] sm:$0xff]  ;;  %v781_v6 = vpack.c.bf16 %v130_v0, %v129_v63  ;;  %v131_v8 = vld [vmem:[#allocation5 + $0x170] sm:$0xff]  ;;  %v75_v28 = vsel %vm73_vm1, %v72_v18, %v71_v17  ;;  %v82_v35 = vsel %vm80_vm0, %v79_v57, %v78_v53 }
  0x46   :  { %740 = vmatpush3.bf16.msra.mxu0 %v739_v38  ;;  %687 = vmatprep.mubr.f32.mxu1 %v81_v61  ;;  %v751_v7 = vpack.c.bf16 %v98_v3, %v97_v2  ;;  %v132_v9 = vld [vmem:[#allocation5 + $0x178] sm:$0xff]  ;;  %v753_v10 = vpack.c.bf16 %v116_v5, %v115_v4  ;;  %v99_v11 = vld [vmem:[#allocation5 + $0x70] sm:$0xff]  ;;  %v320_v13 = vld [vmem:[#allocation7 + $0x80] sm:$0xff]  ;;  %v74_v39 = vsel %vm73_vm1, %v71_v17, %v72_v18 }
  0x47   :  { %742 = vmatprep.subr.bf16.mxu0 %v741_v41  ;;  %v100_v12 = vld [vmem:[#allocation5 + $0x78] sm:$0xff]  ;;  %v321_v14 = vld [vmem:[#allocation7 + $0x88] sm:$0xff]  ;;  %v785_v15 = vpack.c.bf16 %v132_v9, %v131_v8  ;;  %v336_v19 = vld [vmem:[#allocation7 + $0x100] sm:$0xff] }
  0x48   :  { %772 = vmatpush3.bf16.msra.mxu1 %v769_v37  ;;  %v755_v16 = vpack.c.bf16 %v100_v12, %v99_v11  ;;  %v337_v20 = vld [vmem:[#allocation7 + $0x108] sm:$0xff]  ;;  %v789_v21 = vpack.c.bf16 %v321_v14, %v320_v13  ;;  %v304_v22 = vld [vmem:[#allocation7] sm:$0xff]  ;;  %v322_v25 = vld [vmem:[#allocation7 + $0x90] sm:$0xff] }
  0x49   :  { %774 = vmatprep.subr.bf16.mxu1 %v773_v47  ;;  %v305_v23 = vld [vmem:[#allocation7 + $0x8] sm:$0xff]  ;;  %v323_v26 = vld [vmem:[#allocation7 + $0x98] sm:$0xff]  ;;  %v821_v27 = vpack.c.bf16 %v337_v20, %v336_v19  ;;  %v338_v30 = vld [vmem:[#allocation7 + $0x110] sm:$0xff] }
  0x4a   :  { %744 = vmatpush3.bf16.msra.mxu0 %v743_v49  ;;  %v791_v29 = vpack.c.bf16 %v305_v23, %v304_v22  ;;  %v339_v31 = vld [vmem:[#allocation7 + $0x118] sm:$0xff]  ;;  %v793_v32 = vpack.c.bf16 %v323_v26, %v322_v25  ;;  %v306_v33 = vld [vmem:[#allocation7 + $0x10] sm:$0xff]  ;;  %v324_v36 = vld [vmem:[#allocation7 + $0xa0] sm:$0xff] }
  0x4b   :  { %746 = vmatprep.subr.bf16.mxu0 %v745_v54  ;;  %v307_v34 = vld [vmem:[#allocation7 + $0x18] sm:$0xff]  ;;  %v325_v37 = vld [vmem:[#allocation7 + $0xa8] sm:$0xff]  ;;  %v825_v38 = vpack.c.bf16 %v339_v31, %v338_v30  ;;  %v340_v41 = vld [vmem:[#allocation7 + $0x120] sm:$0xff] }
  0x4c   :  { %776 = vmatpush3.bf16.msra.mxu1 %v773_v47  ;;  %v795_v40 = vpack.c.bf16 %v307_v34, %v306_v33  ;;  %v341_v42 = vld [vmem:[#allocation7 + $0x128] sm:$0xff]  ;;  %v797_v43 = vpack.c.bf16 %v325_v37, %v324_v36  ;;  %v308_v44 = vld [vmem:[#allocation7 + $0x20] sm:$0xff]  ;;  %v326_v47 = vld [vmem:[#allocation7 + $0xb0] sm:$0xff] }
  0x4d   :  { %778 = vmatprep.subr.bf16.mxu1 %v777_v60  ;;  %v309_v45 = vld [vmem:[#allocation7 + $0x28] sm:$0xff]  ;;  %v327_v49 = vld [vmem:[#allocation7 + $0xb8] sm:$0xff]  ;;  %v829_v50 = vpack.c.bf16 %v341_v42, %v340_v41  ;;  %v342_v53 = vld [vmem:[#allocation7 + $0x130] sm:$0xff] }
  0x4e   :  { %748 = vmatpush3.bf16.msra.mxu0 %v747_v62  ;;  %v799_v51 = vpack.c.bf16 %v309_v45, %v308_v44  ;;  %v343_v54 = vld [vmem:[#allocation7 + $0x138] sm:$0xff]  ;;  %v801_v55 = vpack.c.bf16 %v327_v49, %v326_v47  ;;  %v310_v56 = vld [vmem:[#allocation7 + $0x30] sm:$0xff]  ;;  %v329_v61 = vld [vmem:[#allocation7 + $0xc8] sm:$0xff] }
  0x4f   :  { %750 = vmatprep.subr.bf16.mxu0 %v749_v1  ;;  %v311_v57 = vld [vmem:[#allocation7 + $0x38] sm:$0xff]  ;;  %v833_v58 = vpack.c.bf16 %v343_v54, %v342_v53  ;;  %v312_v63 = vld [vmem:[#allocation7 + $0x40] sm:$0xff]  ;;  %v313_v0 = vld [vmem:[#allocation7 + $0x48] sm:$0xff] }
  0x50   :  { %780 = vmatpush3.bf16.msra.mxu1 %v777_v60  ;;  %v803_v59 = vpack.c.bf16 %v311_v57, %v310_v56  ;;  %v328_v60 = vld [vmem:[#allocation7 + $0xc0] sm:$0xff]  ;;  %v807_v2 = vpack.c.bf16 %v313_v0, %v312_v63  ;;  %v345_v3 = vld [vmem:[#allocation7 + $0x148] sm:$0xff]  ;;  %v330_v5 = vld [vmem:[#allocation7 + $0xd0] sm:$0xff] }
  0x51   :  { %782 = vmatprep.subr.bf16.mxu1 %v781_v6  ;;  %v805_v62 = vpack.c.bf16 %v329_v61, %v328_v60  ;;  %v344_v1 = vld [vmem:[#allocation7 + $0x140] sm:$0xff]  ;;  %v314_v8 = vld [vmem:[#allocation7 + $0x50] sm:$0xff]  ;;  %v315_v9 = vld [vmem:[#allocation7 + $0x58] sm:$0xff] }
  0x52   :  { %752 = vmatpush3.bf16.msra.mxu0 %v751_v7  ;;  %v837_v4 = vpack.c.bf16 %v345_v3, %v344_v1  ;;  %v346_v11 = vld [vmem:[#allocation7 + $0x150] sm:$0xff]  ;;  %v347_v12 = vld [vmem:[#allocation7 + $0x158] sm:$0xff]  ;;  %v332_v14 = vld [vmem:[#allocation7 + $0xe0] sm:$0xff] }
  0x53   :  { %754 = vmatprep.subr.bf16.mxu0 %v753_v10  ;;  %v811_v10 = vpack.c.bf16 %v315_v9, %v314_v8  ;;  %v841_v13 = vpack.c.bf16 %v347_v12, %v346_v11  ;;  %v316_v17 = vld [vmem:[#allocation7 + $0x60] sm:$0xff]  ;;  %v317_v18 = vld [vmem:[#allocation7 + $0x68] sm:$0xff]  ;;  %v334_v23 = vld [vmem:[#allocation7 + $0xf0] sm:$0xff] }
  0x54   :  { %784 = vmatpush3.bf16.msra.mxu1 %v781_v6  ;;  %v331_v6 = vld [vmem:[#allocation7 + $0xd8] sm:$0xff]  ;;  %v348_v19 = vld [vmem:[#allocation7 + $0x160] sm:$0xff]  ;;  %v815_v20 = vpack.c.bf16 %v317_v18, %v316_v17 }
  0x55   :  { %786 = vmatprep.subr.bf16.mxu1 %v785_v15  ;;  %v809_v7 = vpack.c.bf16 %v331_v6, %v330_v5  ;;  %v335_v25 = vld [vmem:[#allocation7 + $0xf8] sm:$0xff] }
  0x56   :  { %756 = vmatpush3.bf16.msra.mxu0 %v755_v16  ;;  %v817_v26 = vpack.c.bf16 %v335_v25, %v334_v23  ;;  %v351_v31 = vld [vmem:[#allocation7 + $0x178] sm:$0xff] }
  0x57   :  { %790 = vmatprep.subr.bf16.mxu0 %v789_v21  ;;  %v349_v21 = vld [vmem:[#allocation7 + $0x168] sm:$0xff] }
  0x58   :  { %788 = vmatpush3.bf16.msra.mxu1 %v785_v15  ;;  %v333_v15 = vld [vmem:[#allocation7 + $0xe8] sm:$0xff]  ;;  %v845_v22 = vpack.c.bf16 %v349_v21, %v348_v19 }
  0x59   :  { %533 = vmatmul.mubr.msk.f32.vlgmr.msra.gmra.mrb[0].mxu0 %vm541_vm2, %v75_v28  ;;  %822 = vmatprep.subr.bf16.mxu1 %v821_v27  ;;  %v813_v16 = vpack.c.bf16 %v333_v15, %v332_v14  ;;  %v319_v28 = vld [vmem:[#allocation7 + $0x78] sm:$0xff] }
  0x5a   :  { %209 = vmatprep.mubr.f32.mxu0 %v1046_v52  ;;  %792 = vmatpush3.bf16.msra.mxu0 %v791_v29  ;;  %v350_v29 = vld [vmem:[#allocation7 + $0x170] sm:$0xff] }
  0x5b   :  { %688 = vmatmul.mubr.msk.f32.vlgmr.msra.gmra.mrb[0].mxu1 %vm542_vm3, %v82_v35  ;;  %794 = vmatprep.subr.bf16.mxu0 %v793_v32  ;;  %v849_v32 = vpack.c.bf16 %v351_v31, %v350_v29  ;;  %v531_v35 = vld [vmem:[%s1117_s2] ss:$0 sm:$0xff] }
  0x5c   :  { %824 = vmatpush3.bf16.msra.mxu1 %v821_v27  ;;  %v318_v27 = vld [vmem:[#allocation7 + $0x70] sm:$0xff] }
  0x5d   :  { %210 = vmatmul.mubr.f32.gmra.mrb[2].mxu0 %v74_v39  ;;  %826 = vmatprep.subr.bf16.mxu1 %v825_v38  ;;  %v819_v30 = vpack.c.bf16 %v319_v28, %v318_v27 }
  0x5e   :  { %796 = vmatpush3.bf16.msra.mxu0 %v795_v40 }
  0x5f   :  { %798 = vmatprep.subr.bf16.mxu0 %v797_v43 }
  0x60   :  { %828 = vmatpush3.bf16.msra.mxu1 %v825_v38 }
  0x61   :  { %830 = vmatprep.subr.bf16.mxu1 %v829_v50 }
  0x62   :  { %800 = vmatpush3.bf16.msra.mxu0 %v799_v51 }
  0x63   :  { %802 = vmatprep.subr.bf16.mxu0 %v801_v55 }
  0x64   :  { %832 = vmatpush3.bf16.msra.mxu1 %v829_v50 }
  0x65   :  { %834 = vmatprep.subr.bf16.mxu1 %v833_v58 }
  0x66   :  { %804 = vmatpush3.bf16.msra.mxu0 %v803_v59 }
  0x67   :  { %806 = vmatprep.subr.bf16.mxu0 %v805_v62  ;;  %v536_v62 = vld [vmem:[%s1119_s4] ss:$0 sm:$0xff] }
  0x68   :  { %836 = vmatpush3.bf16.msra.mxu1 %v833_v58 }
  0x69   :  { %838 = vmatprep.subr.bf16.mxu1 %v837_v4 }
  0x6a   :  { %808 = vmatpush3.bf16.msra.mxu0 %v807_v2 }
  0x6b   :  { %810 = vmatprep.subr.bf16.mxu0 %v809_v7 }
  0x6c   :  { %840 = vmatpush3.bf16.msra.mxu1 %v837_v4 }
  0x6d   :  { %842 = vmatprep.subr.bf16.mxu1 %v841_v13 }
  0x6e   :  { %812 = vmatpush3.bf16.msra.mxu0 %v811_v10 }
  0x6f   :  { %814 = vmatprep.subr.bf16.mxu0 %v813_v16 }
  0x70   :  { %844 = vmatpush3.bf16.msra.mxu1 %v841_v13 }
  0x71   :  { %846 = vmatprep.subr.bf16.mxu1 %v845_v22 }
  0x72   :  { %816 = vmatpush3.bf16.msra.mxu0 %v815_v20 }
  0x73   :  { %818 = vmatprep.subr.bf16.mxu0 %v817_v26 }
  0x74   :  { %848 = vmatpush3.bf16.msra.mxu1 %v845_v22 }
  0x75   :  { %850 = vmatprep.subr.bf16.mxu1 %v849_v32 }
  0x76   :  { %820 = vmatpush3.bf16.msra.mxu0 %v819_v30 }
  0x78   :  { %852 = vmatpush3.bf16.msra.mxu1 %v849_v32 }
 0x12c   :  { %v575_v33 = vpop.f32.mrb[0].mxu0 }
 0x12d   :  { %v576_v34 = vpop.f32.mrb[1].mxu0 }
 0x12e   :  { %v577_v36 = vadd.f32 %v576_v34, %v575_v33  ;;  %v689_v37 = vpop.f32.mrb[0].mxu1 }
 0x12f   :  { %v281_v38 = vpop.f32.mrb[1].mxu1 }
 0x130   :  { %v578_v39 = vpop.f32.mrb[2].mxu0  ;;  %v207_v40 = vadd.f32 %v577_v36, %v531_v35 }
 0x131   :  { %v579_v41 = vpop.f32.mrb[3].mxu0 }
 0x132   :  { %v580_v42 = vadd.f32 %v579_v41, %v578_v39  ;;  %v282_v43 = vadd.f32 %v281_v38, %v207_v40 }
 0x134   :  { %v212_v44 = vadd.f32 %v580_v42, %v531_v35  ;;  %v290_v45 = vmax.f32 %v282_v43, 0.0 }
 0x136   :  { %v287_v47 = vadd.f32 %v689_v37, %v212_v44  ;;  %423 = vmatprep.mubr.f32.mxu0 %v290_v45  ;;  %v292_v51 = vrot.slane %v290_v45, 7  ;;  %v298_v53 = vrot.slane %v290_v45, 1 }
 0x138   :  { %v291_v49 = vmax.f32 %v287_v47, 0.0 }
 0x13a   :  { %v293_v50 = vrot.slane %v291_v49, 7  ;;  %v299_v54 = vrot.slane %v291_v49, 1 }
 0x13c   :  { %v295_v55 = vsel %vm73_vm1, %v293_v50, %v292_v51  ;;  %v300_v56 = vsel %vm80_vm0, %v298_v53, %v299_v54  ;;  %v301_v57 = vsel %vm80_vm0, %v299_v54, %v298_v53  ;;  %v294_v58 = vsel %vm73_vm1, %v292_v51, %v293_v50 }
 0x13d   :  { %538 = vmatmul.mubr.msk.f32.vlgmr.msra.gmra.mrb[4].mxu0 %vm541_vm2, %v295_v55  ;;  %722 = vmatprep.mubr.f32.mxu1 %v300_v56 }
 0x13e   :  { %428 = vmatprep.mubr.f32.mxu0 %v291_v49  ;;  %723 = vmatmul.mubr.msk.f32.vlgmr.msra.gmra.mrb[2].mxu1 %vm542_vm3, %v301_v57 }
 0x141   :  { %429 = vmatmul.mubr.f32.gmra.mrb[6].mxu0 %v294_v58 }
 0x210   :  { %v631_v59 = vpop.f32.mrb[4].mxu0 }
 0x211   :  { %v632_v60 = vpop.f32.mrb[5].mxu0  ;;  %v724_v61 = vpop.f32.mrb[2].mxu1 }
 0x212   :  { %v633_v63 = vadd.f32 %v632_v60, %v631_v59  ;;  %v500_v0 = vpop.f32.mrb[3].mxu1 }
 0x214   :  { %v426_v1 = vadd.f32 %v633_v63, %v536_v62  ;;  %v634_v2 = vpop.f32.mrb[6].mxu0 }
 0x215   :  { %v635_v3 = vpop.f32.mrb[7].mxu0 }
 0x216   :  { %v501_v46 = vadd.f32 %v500_v0, %v426_v1  ;;  %v636_v4 = vadd.f32 %v635_v3, %v634_v2 }
 0x218   :  { %v509_v5 = vadd.f32 %v501_v46, %v1043_v48  ;;  %v431_v6 = vadd.f32 %v636_v4, %v536_v62 }
 0x21a   :  { %511 = vst [vmem:[#allocation8] sm:$0xff] %v509_v5  ;;  %v506_v24 = vadd.f32 %v724_v61, %v431_v6 }
 0x21c   :  { %v510_v7 = vadd.f32 %v506_v24, %v1046_v52 }
 0x21e   :  { %512 = vst [vmem:[#allocation8 + $0x8] sm:$0xff] %v510_v7 }
 0x21f   :  { %936 = shalt.err (!%p933_p0)
}
 0x220   :  { %s937_s12 = scalar_lea.hbm %s1120_s5, 256 }
 0x221   :  { %p938_p1 = scmp.ne.s32.totalorder %s1120_s5, %s937_s12  ;;  %p941_p2 = scmp.lt.u32.totalorder %s937_s12, %s1120_s5 }
 0x223   :  { %p943_p3 = pnand %p941_p2, %p938_p1 }
 0x225   :  { %946 = shalt.err (!%p943_p3)
}
 0x226   :  { %524 = dma.vmem_to_hbm [thread:$0]  %s519_s9, 256, %s1120_s5, [#allocation4], %s955_s30, %s955_s30, %s956_s6  }
 0x227   :  { %951 = dma.done.wait [#allocation4], 256  }
 0x228   :  { %952 = vsyncadd [#allocation4], 4294967040 }
 0x229   :  { %528 = vsyncpa [#allocation3], 1 }
 0x22a   :  { %529 = vsyncpa [#allocation6], 1 }
 0x22b   :  { %530 = vsyncpa [#allocation4], 1 }

</bundles_post_ra>
